<compile_context>
chip_gen: v7x
topology: tpu7x:2x2x1
jax: 0.10.0
libtpu: 0.0.40
codegen_flags: <defaults>
</compile_context>

<pallas_src>
import functools

import jax
import jax.numpy as jnp
from jax import lax
from jax.experimental import pallas as pl
from jax.experimental.pallas import tpu as pltpu


def _round_up(a, b):
    return ((a + b - 1) // b) * b


def _self_attn_match_kernel(bias_ref, xq_ref, xk_ref, o_ref,
                            m_sc, l_sc, acc_sc):
    # Blocks per grid step (b, qi, ki):
    #   bias_ref (1, 1, tk)   additive mask bias for this key tile
    #   xq_ref   (1, tq, Hp)  query rows
    #   xk_ref   (1, tk, Hp)  key rows (same tensor, different tiling)
    #   o_ref    (1, tq, Hp)  output rows (written only at the last k-tile)
    ki = pl.program_id(2)

    @pl.when(ki == 0)
    def _():
        m_sc[...] = jnp.full_like(m_sc, -jnp.inf)
        l_sc[...] = jnp.zeros_like(l_sc)
        acc_sc[...] = jnp.zeros_like(acc_sc)

    q = xq_ref[0]                                # (tq, Hp)
    k = xk_ref[0]                                # (tk, Hp)
    bias = bias_ref[0]                           # (1, tk)

    # scores = q @ k^T, contracting on H for both operands (no transpose).
    # NOTE: casting q/k (and p below) to bf16 would double MXU throughput on
    # v6e/v7x; kept in the input dtype here to preserve f32 semantics.
    s = lax.dot_general(q, k, (((1,), (1,)), ((), ())),
                        preferred_element_type=jnp.float32)       # (tq, tk)
    s = s + bias                                                  # mask keys

    m_prev = m_sc[...]                                            # (tq, 1)
    m_new = jnp.maximum(m_prev, jnp.max(s, axis=-1, keepdims=True))
    corr = jnp.exp(m_prev - m_new)                                # (tq, 1)
    p = jnp.exp(s - m_new)                                        # (tq, tk)

    l_sc[...] = corr * l_sc[...] + jnp.sum(p, axis=-1, keepdims=True)
    acc_sc[...] = corr * acc_sc[...] + jnp.dot(
        p.astype(xk_ref.dtype), k, preferred_element_type=jnp.float32)
    m_sc[...] = m_new

    @pl.when(ki == pl.num_programs(2) - 1)
    def _():
        inv_l = pl.reciprocal(l_sc[...], approx=True)             # EUP slot
        o_ref[0] = (acc_sc[...] * inv_l).astype(o_ref.dtype)


@functools.partial(jax.jit, static_argnames=("tile",))
def self_attn_match(x, x_mask, *, tile=256):
    """x: (B, S, H) float; x_mask: (B, S), nonzero/True == padding position.

    tile: sequence tile size for both q and k tiles. 256 matches the v6e/v7x
    256x256 MXU (and is a multiple of v5e's 128); sized so the f32 score tile
    plus double-buffered input tiles and the (tq, Hp) accumulator stay well
    under v7x's 64 MiB VMEM.
    """
    B, S, H = x.shape

    Hp = _round_up(max(H, 128), 128)             # lane-dense feature dim
    if S <= tile:
        t = _round_up(max(S, 8), 8)              # single tile, sublane-aligned
        S_pad = t
    else:
        t = tile
        S_pad = _round_up(S, tile)

    x_p = x
    if S_pad != S or Hp != H:
        x_p = jnp.pad(x, ((0, 0), (0, S_pad - S), (0, Hp - H)))

    mask_b = x_mask.astype(jnp.bool_)
    if S_pad != S:
        # padded key positions must never receive attention weight
        mask_b = jnp.pad(mask_b, ((0, 0), (0, S_pad - S)), constant_values=True)
    # additive bias: large finite negative avoids -inf/NaN on fully-masked rows
    bias = jnp.where(mask_b, jnp.float32(-1e30), jnp.float32(0.0))
    bias = bias.reshape(B, 1, S_pad)

    nq = S_pad // t
    nk = S_pad // t

    out = pl.pallas_call(
        _self_attn_match_kernel,
        out_shape=jax.ShapeDtypeStruct((B, S_pad, Hp), x.dtype),
        grid_spec=pltpu.PrefetchScalarGridSpec(
            num_scalar_prefetch=0,
            grid=(B, nq, nk),
            in_specs=[
                pl.BlockSpec((1, 1, t), lambda b, qi, ki: (b, 0, ki)),
                pl.BlockSpec((1, t, Hp), lambda b, qi, ki: (b, qi, 0)),
                pl.BlockSpec((1, t, Hp), lambda b, qi, ki: (b, ki, 0)),
            ],
            out_specs=pl.BlockSpec((1, t, Hp), lambda b, qi, ki: (b, qi, 0)),
            scratch_shapes=[
                pltpu.VMEM((t, 1), jnp.float32),    # running max m
                pltpu.VMEM((t, 1), jnp.float32),    # running sum l
                pltpu.VMEM((t, Hp), jnp.float32),   # f32 output accumulator
            ],
        ),
        compiler_params=pltpu.CompilerParams(
            dimension_semantics=("parallel", "parallel", "arbitrary")),
    )(bias, x_p, x_p)

    return out[:, :S, :H]


def self_attn_match_ref(x, x_mask):
    """Pure-JAX reference for verification."""
    scores = jnp.einsum("bsh,bth->bst", x, x).astype(jnp.float32)
    scores = jnp.where(x_mask[:, None, :], -jnp.inf, scores)
    alpha = jax.nn.softmax(scores, axis=-1)
    return jnp.einsum("bst,bth->bsh", alpha.astype(x.dtype), x)


if __name__ == "__main__":
    key = jax.random.PRNGKey(0)
    kx, kx2 = jax.random.split(key)

    # Small case (single tile path), matches the module's (batch, seq, hidden)
    B, S, H = 2, 8, 32
    x = jax.random.normal(kx, (B, S, H), dtype=jnp.float32)
    x_mask = jnp.zeros((B, S), dtype=jnp.bool_)
    x_mask = x_mask.at[0, S - 2:].set(True)
    x_mask = x_mask.at[1, S - 3:].set(True)

    out = self_attn_match(x, x_mask)
    out = jax.block_until_ready(out)
    ref = self_attn_match_ref(x, x_mask)
    assert out.shape == (B, S, H)
    assert jnp.allclose(out, ref, atol=5e-3, rtol=5e-3), "mismatch (small case)"

    # Multi-tile case exercising the online-softmax across k-tiles
    B2, S2, H2 = 2, 512, 128
    x2 = jax.random.normal(kx2, (B2, S2, H2), dtype=jnp.float32)
    x2_mask = jnp.zeros((B2, S2), dtype=jnp.bool_)
    x2_mask = x2_mask.at[0, S2 - 17:].set(True)
    x2_mask = x2_mask.at[1, S2 - 300:].set(True)

    out2 = self_attn_match(x2, x2_mask)
    out2 = jax.block_until_ready(out2)
    ref2 = self_attn_match_ref(x2, x2_mask)
    assert out2.shape == (B2, S2, H2)
    assert jnp.allclose(out2, ref2, atol=5e-3, rtol=5e-3), "mismatch (tiled case)"

    print("KERNEL_OK")
</pallas_src>

<mosaic_0001>
module attributes {stable_mosaic.version = 11 : i64} {
  func.func @_self_attn_match_kernel(%arg0: i32, %arg1: i32, %arg2: i32, %arg3: memref<1x1x8xf32, #tpu.memory_space<vmem>>, %arg4: memref<1x8x128xf32, #tpu.memory_space<vmem>>, %arg5: memref<1x8x128xf32, #tpu.memory_space<vmem>>, %arg6: memref<1x8x128xf32, #tpu.memory_space<vmem>>, %arg7: memref<8x1xf32, #tpu.memory_space<vmem>>, %arg8: memref<8x1xf32, #tpu.memory_space<vmem>>, %arg9: memref<8x128xf32, #tpu.memory_space<vmem>>) attributes {dimension_semantics = [#tpu.dimension_semantics<parallel>, #tpu.dimension_semantics<parallel>, #tpu.dimension_semantics<arbitrary>], iteration_bounds = array<i64: 2, 1, 1>, scalar_prefetch = 0 : i64, scratch_operands = 3 : i64, tpu.core_type = #tpu.core_type<tc>, window_params = [{transform_indices = @transform_0, window_bounds = array<i64: 1, 1, 8>}, {transform_indices = @transform_1, window_bounds = array<i64: 1, 8, 128>}, {transform_indices = @transform_2, window_bounds = array<i64: 1, 8, 128>}, {transform_indices = @transform_3, window_bounds = array<i64: 1, 8, 128>}]} {
    %c0_i32 = arith.constant 0 : i32
    %0 = arith.cmpi eq, %arg2, %c0_i32 : i32
    %1 = arith.extui %0 : i1 to i32
    %c0_i32_0 = arith.constant 0 : i32
    %2 = arith.cmpi ne, %1, %c0_i32_0 : i32
    scf.if %2 {
      %cst_26 = arith.constant 0xFF800000 : f32
      %37 = vector.broadcast %cst_26 : f32 to vector<8x1xf32>
      %c0_27 = arith.constant 0 : index
      %c0_28 = arith.constant 0 : index
      %38 = vector.load %arg7[%c0_27, %c0_28] : memref<8x1xf32, #tpu.memory_space<vmem>>, vector<8x1xf32>
      tpu.vector_store %arg7[%c0_27, %c0_28], %37 {strides = array<i32>} : memref<8x1xf32, #tpu.memory_space<vmem>>, vector<8x1xf32>,
      %cst_29 = arith.constant 0.000000e+00 : f32
      %39 = vector.broadcast %cst_29 : f32 to vector<8x1xf32>
      %c0_30 = arith.constant 0 : index
      %c0_31 = arith.constant 0 : index
      %40 = vector.load %arg8[%c0_30, %c0_31] : memref<8x1xf32, #tpu.memory_space<vmem>>, vector<8x1xf32>
      tpu.vector_store %arg8[%c0_30, %c0_31], %39 {strides = array<i32>} : memref<8x1xf32, #tpu.memory_space<vmem>>, vector<8x1xf32>,
      %cst_32 = arith.constant 0.000000e+00 : f32
      %41 = vector.broadcast %cst_32 : f32 to vector<8x128xf32>
      %c0_33 = arith.constant 0 : index
      %c0_34 = arith.constant 0 : index
      %42 = vector.load %arg9[%c0_33, %c0_34] : memref<8x128xf32, #tpu.memory_space<vmem>>, vector<8x128xf32>
      tpu.vector_store %arg9[%c0_33, %c0_34], %41 {strides = array<i32>} : memref<8x128xf32, #tpu.memory_space<vmem>>, vector<8x128xf32>,
    } else {
    }
    %c0 = arith.constant 0 : index
    %c0_1 = arith.constant 0 : index
    %c0_2 = arith.constant 0 : index
    %3 = vector.load %arg4[%c0, %c0_1, %c0_2] : memref<1x8x128xf32, #tpu.memory_space<vmem>>, vector<1x8x128xf32>
    %4 = vector.shape_cast %3 : vector<1x8x128xf32> to vector<8x128xf32>
    %c0_3 = arith.constant 0 : index
    %c0_4 = arith.constant 0 : index
    %c0_5 = arith.constant 0 : index
    %5 = vector.load %arg5[%c0_3, %c0_4, %c0_5] : memref<1x8x128xf32, #tpu.memory_space<vmem>>, vector<1x8x128xf32>
    %6 = vector.shape_cast %5 : vector<1x8x128xf32> to vector<8x128xf32>
    %c0_6 = arith.constant 0 : index
    %c0_7 = arith.constant 0 : index
    %c0_8 = arith.constant 0 : index
    %7 = vector.load %arg3[%c0_6, %c0_7, %c0_8] : memref<1x1x8xf32, #tpu.memory_space<vmem>>, vector<1x1x8xf32>
    %8 = vector.shape_cast %7 : vector<1x1x8xf32> to vector<1x8xf32>
    %cst = arith.constant dense<0.000000e+00> : vector<8x8xf32>
    %9 = tpu.matmul %4, %6, %cst {dimension_numbers = #tpu.dot_dimension_numbers<[1], [1], [0], [0], [0, 0, 1, 0], [], []>} : vector<8x128xf32>, vector<8x128xf32>, vector<8x8xf32> -> vector<8x8xf32>
    %10 = vector.broadcast %8 : vector<1x8xf32> to vector<8x8xf32>
    %11 = arith.addf %9, %10 : vector<8x8xf32>
    %c0_9 = arith.constant 0 : index
    %c0_10 = arith.constant 0 : index
    %12 = vector.load %arg7[%c0_9, %c0_10] : memref<8x1xf32, #tpu.memory_space<vmem>>, vector<8x1xf32>
    %cst_11 = arith.constant dense<0xFF800000> : vector<8xf32>
    %13 = vector.multi_reduction <maximumf>, %11, %cst_11 [1] : vector<8x8xf32> to vector<8xf32>
    %14 = vector.shape_cast %13 : vector<8xf32> to vector<8x1xf32>
    %15 = arith.maximumf %12, %14 : vector<8x1xf32>
    %16 = arith.subf %12, %15 : vector<8x1xf32>
    %17 = math.exp %16 : vector<8x1xf32>
    %18 = vector.broadcast %15 : vector<8x1xf32> to vector<8x8xf32>
    %19 = arith.subf %11, %18 : vector<8x8xf32>
    %20 = math.exp %19 : vector<8x8xf32>
    %c0_12 = arith.constant 0 : index
    %c0_13 = arith.constant 0 : index
    %21 = vector.load %arg8[%c0_12, %c0_13] : memref<8x1xf32, #tpu.memory_space<vmem>>, vector<8x1xf32>
    %22 = arith.mulf %17, %21 : vector<8x1xf32>
    %cst_14 = arith.constant dense<0.000000e+00> : vector<8xf32>
    %23 = vector.multi_reduction <add>, %20, %cst_14 [1] : vector<8x8xf32> to vector<8xf32>
    %24 = vector.shape_cast %23 : vector<8xf32> to vector<8x1xf32>
    %25 = arith.addf %22, %24 : vector<8x1xf32>
    %c0_15 = arith.constant 0 : index
    %c0_16 = arith.constant 0 : index
    %26 = vector.load %arg8[%c0_15, %c0_16] : memref<8x1xf32, #tpu.memory_space<vmem>>, vector<8x1xf32>
    tpu.vector_store %arg8[%c0_15, %c0_16], %25 {strides = array<i32>} : memref<8x1xf32, #tpu.memory_space<vmem>>, vector<8x1xf32>,
    %c0_17 = arith.constant 0 : index
    %c0_18 = arith.constant 0 : index
    %27 = vector.load %arg9[%c0_17, %c0_18] : memref<8x128xf32, #tpu.memory_space<vmem>>, vector<8x128xf32>
    %28 = vector.broadcast %17 : vector<8x1xf32> to vector<8x128xf32>
    %29 = arith.mulf %28, %27 : vector<8x128xf32>
    %cst_19 = arith.constant dense<0.000000e+00> : vector<8x128xf32>
    %30 = tpu.matmul %20, %6, %cst_19 {dimension_numbers = #tpu.dot_dimension_numbers<[1], [0], [0], [1], [0, 0, 1, 1], [], []>} : vector<8x8xf32>, vector<8x128xf32>, vector<8x128xf32> -> vector<8x128xf32>
    %31 = arith.addf %29, %30 : vector<8x128xf32>
    %c0_20 = arith.constant 0 : index
    %c0_21 = arith.constant 0 : index
    %32 = vector.load %arg9[%c0_20, %c0_21] : memref<8x128xf32, #tpu.memory_space<vmem>>, vector<8x128xf32>
    tpu.vector_store %arg9[%c0_20, %c0_21], %31 {strides = array<i32>} : memref<8x128xf32, #tpu.memory_space<vmem>>, vector<8x128xf32>,
    %c0_22 = arith.constant 0 : index
    %c0_23 = arith.constant 0 : index
    %33 = vector.load %arg7[%c0_22, %c0_23] : memref<8x1xf32, #tpu.memory_space<vmem>>, vector<8x1xf32>
    tpu.vector_store %arg7[%c0_22, %c0_23], %15 {strides = array<i32>} : memref<8x1xf32, #tpu.memory_space<vmem>>, vector<8x1xf32>,
    %c0_i32_24 = arith.constant 0 : i32
    %34 = arith.cmpi eq, %arg2, %c0_i32_24 : i32
    %35 = arith.extui %34 : i1 to i32
    %c0_i32_25 = arith.constant 0 : i32
    %36 = arith.cmpi ne, %35, %c0_i32_25 : i32
    scf.if %36 {
      %c0_26 = arith.constant 0 : index
      %c0_27 = arith.constant 0 : index
      %37 = vector.load %arg8[%c0_26, %c0_27] : memref<8x1xf32, #tpu.memory_space<vmem>>, vector<8x1xf32>
      %38 = tpu.reciprocal %37 {approx = true} : vector<8x1xf32> -> vector<8x1xf32>
      %c0_28 = arith.constant 0 : index
      %c0_29 = arith.constant 0 : index
      %39 = vector.load %arg9[%c0_28, %c0_29] : memref<8x128xf32, #tpu.memory_space<vmem>>, vector<8x128xf32>
      %40 = vector.broadcast %38 : vector<8x1xf32> to vector<8x128xf32>
      %41 = arith.mulf %39, %40 : vector<8x128xf32>
      %c0_30 = arith.constant 0 : index
      %c0_31 = arith.constant 0 : index
      %c0_32 = arith.constant 0 : index
      %42 = vector.load %arg6[%c0_30, %c0_31, %c0_32] : memref<1x8x128xf32, #tpu.memory_space<vmem>>, vector<1x8x128xf32>
      %43 = vector.shape_cast %42 : vector<1x8x128xf32> to vector<8x128xf32>
      %44 = vector.shape_cast %41 : vector<8x128xf32> to vector<1x8x128xf32>
      tpu.vector_store %arg6[%c0_30, %c0_31, %c0_32], %44 {strides = array<i32>} : memref<1x8x128xf32, #tpu.memory_space<vmem>>, vector<1x8x128xf32>,
    } else {
    }
    return
  }
  func.func @transform_0(%arg0: i32, %arg1: i32, %arg2: i32) -> (i32, i32, i32) {
    %c0_i32 = arith.constant 0 : i32
    %c0_i32_0 = arith.constant 0 : i32
    return %arg0, %c0_i32, %arg2 : i32, i32, i32
  }
  func.func @transform_1(%arg0: i32, %arg1: i32, %arg2: i32) -> (i32, i32, i32) {
    %c0_i32 = arith.constant 0 : i32
    %c0_i32_0 = arith.constant 0 : i32
    return %arg0, %arg1, %c0_i32 : i32, i32, i32
  }
  func.func @transform_2(%arg0: i32, %arg1: i32, %arg2: i32) -> (i32, i32, i32) {
    %c0_i32 = arith.constant 0 : i32
    %c0_i32_0 = arith.constant 0 : i32
    return %arg0, %arg2, %c0_i32 : i32, i32, i32
  }
  func.func @transform_3(%arg0: i32, %arg1: i32, %arg2: i32) -> (i32, i32, i32) {
    %c0_i32 = arith.constant 0 : i32
    %c0_i32_0 = arith.constant 0 : i32
    return %arg0, %arg1, %c0_i32 : i32, i32, i32
  }
}

</mosaic_0001>

<bundles_post_ra>
// kernel: self_attn_match.1
= control target key start
LH: loop header
LB: loop body
LE: loop exit
PB: predicated region body
PF: predicated region fallthrough
CT: control target
= control target key end

     0   :  { %8 = vsyncpa [#allocation6], 0  ;;  %s900_s0 = inlined_call_operand.vmem [shape: f32[2,1,8], index: 0, kind: input, shape index: {}]   ;;  %s901_s1 = inlined_call_operand.vmem [shape: f32[2,8,128], index: 1, kind: input, shape index: {}, may-alias: {1,2}]   ;;  %s902_s2 = inlined_call_operand.vmem [shape: f32[2,8,128], index: 2, kind: input, shape index: {}, may-alias: {1,2}]   ;;  %s903_s3 = inlined_call_operand.hbm [shape: f32[2,8,128], index: 3, kind: output, shape index: {}]  }
   0x1   :  { %10 = vsyncpa [#allocation6 + $0x1], 0  ;;  %s775_s12 = smov 0   ;;  %s777_s13 = smov 0  }
   0x2   :  { %s779_s14 = smov 0   ;;  %s781_s15 = smov 0  }
   0x3   :  { %s783_s16 = smov 0   ;;  %s785_s17 = smov 0  }
   0x4 LB: > { %s575_s18 = sadd.s32 4294967295, %s748_s17   ;;  %s576_s19 = sadd.s32 4294967294, %s748_s17   ;;  %s748_s17 = sphi %s785_s17, %s16_s17   ;;  %s744_s16 = sphi %s783_s16, %s910_s16   ;;  %s740_s15 = sphi %s781_s15, %s909_s15   ;;  %s736_s14 = sphi %s779_s14, %s908_s14   ;;  %s732_s13 = sphi %s777_s13, %s907_s13   ;;  %s728_s12 = sphi %s775_s12, %s906_s12  }
   0x5   : > { %s35_s20 = sadd.s32 1, %s744_s16  ;;  %s128_s21 = sadd.s32 1, %s736_s14 }
   0x6   : > { %p37_p0 = scmp.ge.s32.totalorder %s35_s20, 2  ;;  %p138_p1 = scmp.ne.s32.totalorder %s736_s14, %s732_s13 }
   0x7   : > { %p139_p2 = scmp.eq.s32.totalorder %s575_s18, 1  ;;  %p144_p3 = scmp.ne.s32.totalorder %s732_s13, %s728_s12 }
   0x8   : > { %s912_s20 = smov (%p37_p0, %s35_s20), 0  ;;  %p145_p5 = scmp.eq.s32.totalorder %s576_s19, 1 }
   0x9   : > { %p815_p4 = por %p139_p2, %p138_p1  ;;  %s123_s23 = ssub.s32 %s744_s16, %s912_s20 }
   0xa   : > { %p579_p6 = scmp.ge.s32.totalorder %s748_s17, 1  ;;  %p126_p7 = scmp.eq.s32.totalorder %s123_s23, 0 }
   0xb   : > { %p822_p8 = por %p145_p5, %p144_p3  ;;  %p192_p9 = scmp.lt.s32.totalorder %s748_s17, 3 }
   0xc   : > { %s828_s25 = scalar_select %p126_p7, %s736_s14, %s128_s21  }
   0xd   : > { %p193_p10 = pnand %p579_p6, %p192_p9 }
   0xe   : > { %p231_p11 = scmp.lt.s32.totalorder (!%p193_p10), %s740_s15, 1  ;;  %v750_v0 = vmov (!%p193_p10), 0.0   ;;  %vm751_vm0 = vmmov (!%p193_p10), 0   ;;  %vm255_vm1 = vcmask (!%p193_p10), 7168   ;;  %v752_v3 = vmov (!%p193_p10), -inf   ;;  %s228_s10 = sand.u32 (!%p193_p10), 1, %s732_s13  }
   0xf   : > { %196 = sbr.rel (%p193_p10) target bundleno = 840 (0x348), region = 32  ;;  %593 = vmatprep.subr.mxu0 (!%p193_p10), %v750_v0  ;;  %595 = vmatprep.mubr.msk.f32.mxu0 (!%p193_p10), %vm751_vm0, %v750_v0  ;;  %256 = vst.msk [vmem:[#allocation2] sm:$0xff] (!%p193_p10), %vm255_vm1, %v752_v3  ;;  %257 = vst.msk [vmem:[#allocation3] sm:$0xff] (!%p193_p10), %vm255_vm1, %v750_v0  ;;  %vm339_vm2 = vcmask (!%p193_p10), 64512   ;;  %v753_v9 = vmov (!%p193_p10), 0   ;;  %s580_s11 = sshll.u32 (!%p193_p10), %s228_s10, 3 }
  0x10   : > { %598 = vmatprep.subr.mxu1 (!%p193_p10), %v750_v0  ;;  %600 = vmatprep.mubr.msk.f32.mxu1 (!%p193_p10), %vm751_vm0, %v750_v0  ;;  %s586_s18 = sshll.u32 (!%p193_p10), %s740_s15, 7  ;;  %s230_s19 = scalar_lea.vmem (!%p193_p10), [#allocation5], %s580_s11 }
  0x11   : > { %662 = vset.pattern.permute.xlu0 (!%p193_p10), %v753_v9  ;;  %663 = vset.pattern.permute.xlu1 (!%p193_p10), %v753_v9  ;;  %s474_s21 = sshll.u32 (!%p193_p10), %s230_s19, 4  ;;  %s460_s28 = scalar_lea.sflag (!%p193_p10), [#allocation6], %s228_s10  ;;  %s855_s21 = int_to_ptr.vmem [resolvable:$true] %s474_s21 }
  0x12   : > { %s670_s29 = scalar_lea.vmem (!%p193_p10), %s855_s21, 128 }
  0x13   : > { %p671_p12 = scmp.ne.s32.totalorder (!%p193_p10), %s855_s21, %s670_s29 }
  0x15   : > { %p672_p13 = pnand (!%p193_p10), %p671_p12, %p815_p4 }
  0x16   : > { %s232_s26 = scalar_select %p231_p11, %s740_s15, 1  ;;  %v338_v10 = vld [vmem:[#allocation2] sm:$0xff]  ;;  %v355_v21 = vld [vmem:[#allocation3] sm:$0xff] }
  0x17   : > { %p673_p0 = pneg %p672_p13  ;;  %s754_s15 = smov [#allocation5]  }
  0x18   : > { %s581_s27 = sshll.u32 %s232_s26, 3  ;;  %s236_s9 = scalar_lea.vmem %s900_s0, %s232_s26 }
  0x19   : > { %s250_s30 = scalar_lea.vmem %s902_s2, %s581_s27  ;;  %s243_s6 = scalar_lea.vmem %s901_s1, %s581_s27  ;;  %v583_v4 = vld [vmem:[%s236_s9] ss:$0 sm:$0xff] }
  0x1a   : > { %v260_v1 = vld [vmem:[%s250_s30] sm:$0xff]  ;;  %s853_s27 = scalar_lea.hbm %s903_s3, %s586_s18  ;;  %s674_s30 = sshll.u32 %s754_s15, 4  ;;  %s675_s30 = int_to_ptr.vmem [resolvable:$false] %s674_s30 }
  0x1b   : > { %594 = vmatpush3.xpose.msra.mxu0 %v260_v1  ;;  %v259_v2 = vld [vmem:[%s243_s6] sm:$0xff]  ;;  %599 = vmatpush3.msra.mxu1 %v260_v1  ;;  %s676_s4 = scalar_lea.vmem %s675_s30, 256  ;;  %p677_p1 = scmp.lt.s32.totalorder %s855_s21, %s675_s30 }
  0x1c   : > { %p678_p2 = scmp.lt.s32.totalorder %s676_s4, %s670_s29 }
  0x1e   : > { %596 = vmatmul.mubr.f32.vlgmr.msra.gmra.mrb[0].mxu0 %v259_v2  ;;  %p679_p3 = por %p678_p2, %p677_p1 }
  0x20   : > { %p680_p5 = pnand %p679_p3, %p673_p0 }
  0xf1   : > { %v334_v5 = vpop.f32.mrb[0].mxu0 }
  0xf2   : > { %v335_v6 = vadd.f32 %v583_v4, %v334_v5  ;;  %v597_v7 = vpop.f32.mrb[1].mxu0 }
  0xf4   : > { %v340_v8 = vsel %vm339_vm2, %v335_v6, -inf }
  0xf5   : > { %341 = vmax.xlane.f32.xlu0 %v340_v8 }
 0x182   : > { %v342_v11 = vpop.xlane.xlu0 %341 }
 0x183   : > { %v343_v12 = vmax.f32 %v338_v10, %v342_v11 }
 0x185   : > { %v344_v13 = vsub.f32 %v338_v10, %v343_v12  ;;  %445 = vst.msk [vmem:[#allocation2] sm:$0xff] %vm255_vm1, %v343_v12  ;;  %349 = vperm.xlu0 %662, %v343_v12  }
 0x187   : > { %v345_v19 = vmul.f32 1.442695, %v344_v13 }
 0x204   : > { %v350_v14 = vpop.permute.xlu0 %349 }
 0x205   : > { %v352_v15 = vsub.f32 %v335_v6, %v350_v14 }
 0x207   : > { %v353_v16 = vmul.f32 1.442695, %v352_v15 }
 0x209   : > { %664 = vpow2.f32 %v353_v16 }
 0x20a   : > { %666 = vpow2.f32 %v345_v19 }
 0x213   : > { %v665_v17 = vpop.eup %664 }
 0x214   : > { %601 = vmatmul.mubr.msk.f32.vlgmr.msra.gmra.mrb[0].mxu1 %vm339_vm2, %v665_v17  ;;  %v357_v18 = vsel %vm339_vm2, %v665_v17, 0.0  ;;  %v667_v20 = vpop.eup %666 }
 0x215   : > { %358 = vadd.xlane.f32.xlu1 %v357_v18  ;;  %v356_v22 = vmul.f32 %v667_v20, %v355_v21 }
 0x226   : > { %366 = vperm.xlu1 %663, %v667_v20  }
 0x2a2   : > { %v359_v23 = vpop.xlane.xlu1 %358 }
 0x2a3   : > { %v360_v24 = vadd.f32 %v359_v23, %v356_v22 }
 0x2a5   : > { %362 = vst.msk [vmem:[#allocation3] sm:$0xff] %vm255_vm1, %v360_v24 }
 0x2a6   : > { %v367_v29 = vpop.permute.xlu1 %366 }
 0x2a7   : > { %v369_v30 = vmul.f32 0.0, %v367_v29 }
 0x2ac   : > { %v449_v25 = vld [vmem:[#allocation3] sm:$0xff] }
 0x2ad   : > { %668 = vrcp.f32 %v449_v25 }
 0x2b7   : > { %v669_v26 = vpop.eup %668 }
 0x2b8   : > { %454 = vperm.xlu1 %663, %v669_v26  }
 0x2e7   : > { %v439_v27 = vpop.f32.mrb[0].mxu1 }
 0x2e8   : > { %v602_v28 = vpop.f32.mrb[1].mxu1  ;;  %v443_v31 = vadd.f32 %v439_v27, %v369_v30 }
 0x337   : > { %v455_v32 = vpop.permute.xlu1 %454 }
 0x338   : > { %v457_v33 = vmul.f32 %v455_v32, %v443_v31 }
 0x33a   : > { %458 = vst [vmem:[%s230_s19] sm:$0xff] %v457_v33 }
 0x33b   : > { %683 = shalt.err (!%p680_p5)
}
 0x33c   : > { %s684_s5 = scalar_lea.hbm %s853_s27, 128  ;;  %s688_s8 = scalar_lea.hbm %s903_s3, 256 }
 0x33d   : > { %p685_p6 = scmp.ne.s32.totalorder %s853_s27, %s684_s5  ;;  %p689_p10 = scmp.lt.u32.totalorder %s853_s27, %s903_s3 }
 0x33e   : > { %p690_p11 = scmp.lt.u32.totalorder %s688_s8, %s684_s5  ;;  %p692_p13 = scmp.lt.u32.totalorder %s684_s5, %s853_s27 }
 0x33f   : > { %p686_p7 = pnand %p685_p6, %p815_p4 }
 0x340   : > { %p691_p12 = por %p690_p11, %p689_p10 }
 0x341   : > { %p687_p9 = pneg %p686_p7 }
 0x342   : > { %p693_p0 = por %p692_p13, %p691_p12 }
 0x344   : > { %p694_p1 = pnand %p693_p0, %p687_p9 }
 0x346   : > { %697 = shalt.err (!%p694_p1)
}
 0x347   : > { %603 = dma.vmem_to_hbm [thread:$0]  (%p815_p4), %s855_s21, 128, %s853_s27, %s460_s28  }
 0x348 PF: > { %p609_p2 = scmp.ge.s32.totalorder %s748_s17, 2  ;;  %s486_s11 = sand.u32 1, %s728_s12  }
 0x349   : > { %s487_s18 = scalar_lea.sflag [#allocation6], %s486_s11 }
 0x34a   : > { %p606_p3 = pnand %p609_p2, %p822_p8 }
 0x34c   : > { %723 = dma.done.wait (!%p606_p3), %s487_s18, 128  }
 0x34d   : > { %725 = vsyncadd (!%p606_p3), %s487_s18, 4294967168  ;;  %s16_s17 = sadd.s32 1, %s748_s17   ;;  %s906_s12 = smov %s732_s13 }
 0x34e   : > { %p13_p5 = scmp.ge.s32.totalorder %s16_s17, 4   ;;  %s907_s13 = smov %s736_s14 }
 0x34f   : > { %s908_s14 = smov %s828_s25  ;;  %s909_s15 = smov %s744_s16 }
 0x350   : > { %s910_s16 = smov %s912_s20  ;;  %15 = sbr.rel (!%p13_p5) target bundleno = 4 (0x4), region = 81 }
 0x357   :  { %492 = vsyncpa [#allocation6], 1 }
 0x358   :  { %494 = vsyncpa [#allocation6 + $0x1], 1 }

</bundles_post_ra>
